<compile_context>
chip_gen: v5e
topology: v5e:2x2
jax: 0.10.0
libtpu: 0.0.40
codegen_flags: <defaults>
</compile_context>

<pallas_src>
import functools

import jax
import jax.numpy as jnp
from jax.experimental import pallas as pl
from jax.experimental.pallas import tpu as pltpu

LANES = 128
SUBLANES = 8


def _round_up(x, m):
    return ((x + m - 1) // m) * m


def qnet_kernel(x_ref, w1_ref, b1_ref, w2_ref, b2_ref, w3_ref, b3_ref, o_ref):
    """Fused MLP: (x @ W1 + b1) -> ReLU -> (@ W2 + b2) -> ReLU -> (@ W3 + b3).

    Matmul inputs are cast to the (possibly bf16) weight dtype; accumulation is
    always f32 via preferred_element_type; bias adds and ReLU stay in f32 (cheap
    on every VPU generation, avoids bf16-elementwise penalty on v5e).
    """
    wdt = w1_ref.dtype
    x = x_ref[...]

    h1 = jnp.dot(x.astype(wdt), w1_ref[...], preferred_element_type=jnp.float32)
    h1 = jnp.maximum(h1 + b1_ref[...], 0.0)

    h2 = jnp.dot(h1.astype(wdt), w2_ref[...], preferred_element_type=jnp.float32)
    h2 = jnp.maximum(h2 + b2_ref[...], 0.0)

    out = jnp.dot(h2.astype(wdt), w3_ref[...], preferred_element_type=jnp.float32)
    o_ref[...] = (out + b3_ref[...]).astype(o_ref.dtype)


@functools.partial(jax.jit, static_argnames=("tile_m", "weight_dtype"))
def qnetwork_forward(x, params, *, tile_m=256, weight_dtype=jnp.float32):
    """x: (B, input_dim) float32. params: dict of w1,b1,w2,b2,w3,b3 (f32).

    Returns (B, output_dim) float32 Q-values.
    """
    w1, b1, w2, b2, w3, b3 = (params[k] for k in ("w1", "b1", "w2", "b2", "w3", "b3"))
    B, in_dim = x.shape
    hidden = w1.shape[1]
    out_dim = w3.shape[1]

    # --- lane-dense output: zero-pad the last layer's columns to a 128 multiple ---
    out_pad = _round_up(out_dim, LANES)
    if out_pad != out_dim:
        w3 = jnp.zeros((hidden, out_pad), w3.dtype).at[:, :out_dim].set(w3)
        b3 = jnp.zeros((1, out_pad), b3.dtype).at[:, :out_dim].set(b3)

    # --- weights in MXU-friendly dtype (bf16 on v6e/v7x); biases stay f32 ---
    w1c = w1.astype(weight_dtype)
    w2c = w2.astype(weight_dtype)
    w3c = w3.astype(weight_dtype)

    # --- batch tiling (sublane-aligned); pad batch so every tile is full ---
    tm = _round_up(min(tile_m, _round_up(B, SUBLANES)), SUBLANES)
    b_pad = _round_up(B, tm)
    if b_pad != B:
        x = jnp.zeros((b_pad, in_dim), x.dtype).at[:B].set(x)

    grid = (b_pad // tm,)

    def resident(a):
        # One-time DMA: block index is constant across the grid, so the whole
        # (small) weight/bias array stays resident in VMEM.
        return pl.BlockSpec(a.shape, lambda i: tuple(0 for _ in a.shape))

    out = pl.pallas_call(
        qnet_kernel,
        out_shape=jax.ShapeDtypeStruct((b_pad, out_pad), jnp.float32),
        grid=grid,
        in_specs=[
            pl.BlockSpec((tm, in_dim), lambda i: (i, 0)),   # x: tiled over batch
            resident(w1c), resident(b1),
            resident(w2c), resident(b2),
            resident(w3c), resident(b3),
        ],
        out_specs=pl.BlockSpec((tm, out_pad), lambda i: (i, 0)),
        compiler_params=pltpu.CompilerParams(
            dimension_semantics=("parallel",),      # megacore split on v7x
            vmem_limit_bytes=32 * 1024 * 1024,      # explicit; fits all generations
        ),
    )(x, w1c, b1, w2c, b2, w3c, b3)

    # Strip batch padding and the zero-padded output lanes.
    return out[:B, :out_dim]


def init_params(key, input_dim, output_dim, hidden=128):
    """PyTorch Linear default init: U[-1/sqrt(fan_in), +1/sqrt(fan_in)]."""
    ks = jax.random.split(key, 6)

    def linear(kw, kb, fan_in, fan_out):
        bound = 1.0 / jnp.sqrt(jnp.float32(fan_in))
        w = jax.random.uniform(kw, (fan_in, fan_out), jnp.float32, -bound, bound)
        b = jax.random.uniform(kb, (1, fan_out), jnp.float32, -bound, bound)
        return w, b

    w1, b1 = linear(ks[0], ks[1], input_dim, hidden)
    w2, b2 = linear(ks[2], ks[3], hidden, hidden)
    w3, b3 = linear(ks[4], ks[5], hidden, output_dim)
    return {"w1": w1, "b1": b1, "w2": w2, "b2": b2, "w3": w3, "b3": b3}


def reference_forward(x, p):
    h1 = jnp.maximum(x @ p["w1"] + p["b1"], 0.0)
    h2 = jnp.maximum(h1 @ p["w2"] + p["b2"], 0.0)
    return h2 @ p["w3"] + p["b3"]


def reference_forward_cast(x, p, dtype):
    """Same math as the bf16-weight kernel path: bf16 matmul inputs, f32 accum."""
    w1, w2, w3 = (p[k].astype(dtype) for k in ("w1", "w2", "w3"))
    h1 = jnp.dot(x.astype(dtype), w1, preferred_element_type=jnp.float32) + p["b1"]
    h1 = jnp.maximum(h1, 0.0)
    h2 = jnp.dot(h1.astype(dtype), w2, preferred_element_type=jnp.float32) + p["b2"]
    h2 = jnp.maximum(h2, 0.0)
    return jnp.dot(h2.astype(dtype), w3, preferred_element_type=jnp.float32) + p["b3"]


if __name__ == "__main__":
    key = jax.random.PRNGKey(0)
    k_x, k_p = jax.random.split(key)

    batch, input_dim, output_dim = 256, 8, 4   # small RL-style state/action dims
    x = jax.random.normal(k_x, (batch, input_dim), jnp.float32)
    params = init_params(k_p, input_dim, output_dim)

    # f32-weight path (exercises the batch grid: 256 / tile_m=128 -> 2 tiles).
    out_f32 = jax.block_until_ready(
        qnetwork_forward(x, params, tile_m=128, weight_dtype=jnp.float32))
    ref_f32 = reference_forward(x, params)
    assert out_f32.shape == (batch, output_dim)
    assert jnp.allclose(out_f32, ref_f32, atol=1e-4, rtol=1e-5)

    # bf16-weight path (MXU-native on v6e/v7x), checked against matching bf16 math.
    out_bf16 = jax.block_until_ready(
        qnetwork_forward(x, params, tile_m=128, weight_dtype=jnp.bfloat16))
    ref_bf16 = reference_forward_cast(x, params, jnp.bfloat16)
    assert out_bf16.shape == (batch, output_dim)
    assert jnp.allclose(out_bf16, ref_bf16, atol=1e-3, rtol=1e-3)

    # Non-aligned batch (exercises batch padding path).
    out_small = jax.block_until_ready(
        qnetwork_forward(x[:5], params, tile_m=128, weight_dtype=jnp.float32))
    assert out_small.shape == (5, output_dim)
    assert jnp.allclose(out_small, ref_f32[:5], atol=1e-4, rtol=1e-5)

    print("KERNEL_OK")
</pallas_src>

<mosaic_0001>
module attributes {stable_mosaic.version = 11 : i64} {
  func.func @qnet_kernel(%arg0: i32, %arg1: memref<128x8xf32, #tpu.memory_space<vmem>>, %arg2: memref<8x128xf32, #tpu.memory_space<vmem>>, %arg3: memref<1x128xf32, #tpu.memory_space<vmem>>, %arg4: memref<128x128xf32, #tpu.memory_space<vmem>>, %arg5: memref<1x128xf32, #tpu.memory_space<vmem>>, %arg6: memref<128x128xf32, #tpu.memory_space<vmem>>, %arg7: memref<1x128xf32, #tpu.memory_space<vmem>>, %arg8: memref<128x128xf32, #tpu.memory_space<vmem>>) attributes {dimension_semantics = [#tpu.dimension_semantics<parallel>], iteration_bounds = array<i64: 2>, scalar_prefetch = 0 : i64, scratch_operands = 0 : i64, tpu.core_type = #tpu.core_type<tc>, window_params = [{transform_indices = @transform_0, window_bounds = array<i64: 128, 8>}, {pipeline_mode = #tpu.pipeline_mode<synchronous>, transform_indices = @transform_1, window_bounds = array<i64: 8, 128>}, {pipeline_mode = #tpu.pipeline_mode<synchronous>, transform_indices = @transform_2, window_bounds = array<i64: 1, 128>}, {pipeline_mode = #tpu.pipeline_mode<synchronous>, transform_indices = @transform_3, window_bounds = array<i64: 128, 128>}, {pipeline_mode = #tpu.pipeline_mode<synchronous>, transform_indices = @transform_4, window_bounds = array<i64: 1, 128>}, {pipeline_mode = #tpu.pipeline_mode<synchronous>, transform_indices = @transform_5, window_bounds = array<i64: 128, 128>}, {pipeline_mode = #tpu.pipeline_mode<synchronous>, transform_indices = @transform_6, window_bounds = array<i64: 1, 128>}, {transform_indices = @transform_7, window_bounds = array<i64: 128, 128>}]} {
    %c0 = arith.constant 0 : index
    %c0_0 = arith.constant 0 : index
    %0 = vector.load %arg1[%c0, %c0_0] : memref<128x8xf32, #tpu.memory_space<vmem>>, vector<128x8xf32>
    %c0_1 = arith.constant 0 : index
    %c0_2 = arith.constant 0 : index
    %1 = vector.load %arg2[%c0_1, %c0_2] : memref<8x128xf32, #tpu.memory_space<vmem>>, vector<8x128xf32>
    %cst = arith.constant dense<0.000000e+00> : vector<128x128xf32>
    %2 = tpu.matmul %0, %1, %cst {dimension_numbers = #tpu.dot_dimension_numbers<[1], [0], [0], [1], [0, 0, 1, 1], [], []>} : vector<128x8xf32>, vector<8x128xf32>, vector<128x128xf32> -> vector<128x128xf32>
    %c0_3 = arith.constant 0 : index
    %c0_4 = arith.constant 0 : index
    %3 = vector.load %arg3[%c0_3, %c0_4] : memref<1x128xf32, #tpu.memory_space<vmem>>, vector<1x128xf32>
    %4 = vector.broadcast %3 : vector<1x128xf32> to vector<128x128xf32>
    %5 = arith.addf %2, %4 : vector<128x128xf32>
    %cst_5 = arith.constant 0.000000e+00 : f32
    %6 = vector.broadcast %cst_5 : f32 to vector<128x128xf32>
    %7 = arith.maximumf %5, %6 : vector<128x128xf32>
    %c0_6 = arith.constant 0 : index
    %c0_7 = arith.constant 0 : index
    %8 = vector.load %arg4[%c0_6, %c0_7] : memref<128x128xf32, #tpu.memory_space<vmem>>, vector<128x128xf32>
    %cst_8 = arith.constant dense<0.000000e+00> : vector<128x128xf32>
    %9 = tpu.matmul %7, %8, %cst_8 {dimension_numbers = #tpu.dot_dimension_numbers<[1], [0], [0], [1], [0, 0, 1, 1], [], []>} : vector<128x128xf32>, vector<128x128xf32>, vector<128x128xf32> -> vector<128x128xf32>
    %c0_9 = arith.constant 0 : index
    %c0_10 = arith.constant 0 : index
    %10 = vector.load %arg5[%c0_9, %c0_10] : memref<1x128xf32, #tpu.memory_space<vmem>>, vector<1x128xf32>
    %11 = vector.broadcast %10 : vector<1x128xf32> to vector<128x128xf32>
    %12 = arith.addf %9, %11 : vector<128x128xf32>
    %cst_11 = arith.constant 0.000000e+00 : f32
    %13 = vector.broadcast %cst_11 : f32 to vector<128x128xf32>
    %14 = arith.maximumf %12, %13 : vector<128x128xf32>
    %c0_12 = arith.constant 0 : index
    %c0_13 = arith.constant 0 : index
    %15 = vector.load %arg6[%c0_12, %c0_13] : memref<128x128xf32, #tpu.memory_space<vmem>>, vector<128x128xf32>
    %cst_14 = arith.constant dense<0.000000e+00> : vector<128x128xf32>
    %16 = tpu.matmul %14, %15, %cst_14 {dimension_numbers = #tpu.dot_dimension_numbers<[1], [0], [0], [1], [0, 0, 1, 1], [], []>} : vector<128x128xf32>, vector<128x128xf32>, vector<128x128xf32> -> vector<128x128xf32>
    %c0_15 = arith.constant 0 : index
    %c0_16 = arith.constant 0 : index
    %17 = vector.load %arg7[%c0_15, %c0_16] : memref<1x128xf32, #tpu.memory_space<vmem>>, vector<1x128xf32>
    %18 = vector.broadcast %17 : vector<1x128xf32> to vector<128x128xf32>
    %19 = arith.addf %16, %18 : vector<128x128xf32>
    %c0_17 = arith.constant 0 : index
    %c0_18 = arith.constant 0 : index
    %20 = vector.load %arg8[%c0_17, %c0_18] : memref<128x128xf32, #tpu.memory_space<vmem>>, vector<128x128xf32>
    tpu.vector_store %arg8[%c0_17, %c0_18], %19 {strides = array<i32>} : memref<128x128xf32, #tpu.memory_space<vmem>>, vector<128x128xf32>,
    return
  }
  func.func @transform_0(%arg0: i32) -> (i32, i32) {
    %c0_i32 = arith.constant 0 : i32
    %c0_i32_0 = arith.constant 0 : i32
    return %arg0, %c0_i32 : i32, i32
  }
  func.func @transform_1(%arg0: i32) -> (i32, i32) {
    %c0_i32 = arith.constant 0 : i32
    %c0_i32_0 = arith.constant 0 : i32
    %c0_i32_1 = arith.constant 0 : i32
    return %c0_i32, %c0_i32_0 : i32, i32
  }
  func.func @transform_2(%arg0: i32) -> (i32, i32) {
    %c0_i32 = arith.constant 0 : i32
    %c0_i32_0 = arith.constant 0 : i32
    %c0_i32_1 = arith.constant 0 : i32
    return %c0_i32, %c0_i32_0 : i32, i32
  }
  func.func @transform_3(%arg0: i32) -> (i32, i32) {
    %c0_i32 = arith.constant 0 : i32
    %c0_i32_0 = arith.constant 0 : i32
    %c0_i32_1 = arith.constant 0 : i32
    return %c0_i32, %c0_i32_0 : i32, i32
  }
  func.func @transform_4(%arg0: i32) -> (i32, i32) {
    %c0_i32 = arith.constant 0 : i32
    %c0_i32_0 = arith.constant 0 : i32
    %c0_i32_1 = arith.constant 0 : i32
    return %c0_i32, %c0_i32_0 : i32, i32
  }
  func.func @transform_5(%arg0: i32) -> (i32, i32) {
    %c0_i32 = arith.constant 0 : i32
    %c0_i32_0 = arith.constant 0 : i32
    %c0_i32_1 = arith.constant 0 : i32
    return %c0_i32, %c0_i32_0 : i32, i32
  }
  func.func @transform_6(%arg0: i32) -> (i32, i32) {
    %c0_i32 = arith.constant 0 : i32
    %c0_i32_0 = arith.constant 0 : i32
    %c0_i32_1 = arith.constant 0 : i32
    return %c0_i32, %c0_i32_0 : i32, i32
  }
  func.func @transform_7(%arg0: i32) -> (i32, i32) {
    %c0_i32 = arith.constant 0 : i32
    %c0_i32_0 = arith.constant 0 : i32
    return %arg0, %c0_i32 : i32, i32
  }
}

</mosaic_0001>

<bundles_post_ra>
// kernel: qnetwork_forward.1
= control target key start
LH: loop header
LB: loop body
LE: loop exit
PB: predicated region body
PF: predicated region fallthrough
CT: control target
= control target key end

     0   :  { %s809_s24 = smov 0   ;;  %s1011_s0 = inlined_call_operand.vmem [shape: f32[256,8], index: 0, kind: input, shape index: {}]   ;;  %s1012_s1 = inlined_call_operand.vmem [shape: f32[8,128], index: 1, kind: input, shape index: {}]   ;;  %s1013_s2 = inlined_call_operand.vmem [shape: f32[1,128], index: 2, kind: input, shape index: {}]   ;;  %s1014_s3 = inlined_call_operand.vmem [shape: f32[128,128], index: 3, kind: input, shape index: {}]   ;;  %s1015_s4 = inlined_call_operand.vmem [shape: f32[1,128], index: 4, kind: input, shape index: {}]   ;;  %s1016_s5 = inlined_call_operand.vmem [shape: f32[128,128], index: 5, kind: input, shape index: {}]   ;;  %s1017_s6 = inlined_call_operand.vmem [shape: f32[1,128], index: 6, kind: input, shape index: {}]   ;;  %s1018_s7 = inlined_call_operand.vmem [shape: f32[256,128], index: 7, kind: output, shape index: {}]  }
   0x1 LB: > { %s691_s25 = sadd.s32 4294967295, %s767_s24   ;;  %p695_p0 = scmp.ge.s32.totalorder %s767_s24, 1  ;;  %s767_s24 = sphi %s809_s24, %s17_s24  }
   0x2   : > { %p238_p1 = scmp.lt.s32.totalorder %s767_s24, 3 }
   0x4   : > { %p239_p2 = pnand %p695_p0, %p238_p1 }
   0x5   : > { %s696_s28 = sshll.u32 (!%p239_p2), %s691_s25, 4 }
   0x6   : > { %242 = sbr.rel (%p239_p2) target bundleno = 536 (0x218), region = 48  ;;  %p271_p3 = scmp.lt.s32.totalorder (!%p239_p2), %s696_s28, 31 }
   0xb   : > { %v298_v0 = vld [vmem:[%s1012_s1] sm:$0xff]  ;;  %s1020_s28 = smov (!%p271_p3, %s696_s28), 31  ;;  %vm303_vm0 = vcmask 64512   ;;  %v448_v10 = vld [vmem:[%s1014_s3 + $0x78] sm:$0xff]  ;;  %v447_v11 = vld [vmem:[%s1014_s3 + $0x70] sm:$0xff] }
   0xc   : > { %367 = vmatpush.msra.mxu0 %v298_v0  ;;  %s697_s29 = sshll.u32 %s1020_s28, 3  ;;  %453 = vmatpush.msra.mxu1 %v448_v10  ;;  %v446_v12 = vld [vmem:[%s1014_s3 + $0x68] sm:$0xff]  ;;  %v445_v14 = vld [vmem:[%s1014_s3 + $0x60] sm:$0xff]  ;;  %v444_v15 = vld [vmem:[%s1014_s3 + $0x58] sm:$0xff] }
   0xd   : > { %s828_s9 = scalar_lea.vmem %s1011_s0, %s697_s29  ;;  %718 = vmatpush.msra.mxu3 %v448_v10  ;;  %v443_v16 = vld [vmem:[%s1014_s3 + $0x50] sm:$0xff]  ;;  %v442_v17 = vld [vmem:[%s1014_s3 + $0x48] sm:$0xff]  ;;  %v441_v19 = vld [vmem:[%s1014_s3 + $0x40] sm:$0xff]  ;;  %s990_s23 = scalar_lea.vmem %s1018_s7, %s697_s29 }
   0xe   : > { %v282_v1 = vld [vmem:[%s828_s9] sm:$0xff]  ;;  %v283_v2 = vld [vmem:[%s828_s9 + $0x8] sm:$0xff]  ;;  %v284_v3 = vld [vmem:[%s828_s9 + $0x10] sm:$0xff]  ;;  %454 = vmatpush.msra.mxu1 %v447_v11 }
   0xf   : > { %700 = vmatmul.msk.f32.vlgmr.msra.gmra.mxu0 %vm303_vm0, %v282_v1  ;;  %v285_v4 = vld [vmem:[%s828_s9 + $0x18] sm:$0xff]  ;;  %v286_v5 = vld [vmem:[%s828_s9 + $0x20] sm:$0xff]  ;;  %v287_v6 = vld [vmem:[%s828_s9 + $0x28] sm:$0xff]  ;;  %719 = vmatpush.msra.mxu3 %v447_v11 }
  0x10   : > { %v288_v7 = vld [vmem:[%s828_s9 + $0x30] sm:$0xff]  ;;  %v289_v8 = vld [vmem:[%s828_s9 + $0x38] sm:$0xff]  ;;  %v290_v9 = vld [vmem:[%s828_s9 + $0x40] sm:$0xff]  ;;  %455 = vmatpush.msra.mxu1 %v446_v12 }
  0x11   : > { %v291_v13 = vld [vmem:[%s828_s9 + $0x48] sm:$0xff]  ;;  %720 = vmatpush.msra.mxu3 %v446_v12  ;;  %v292_v18 = vld [vmem:[%s828_s9 + $0x50] sm:$0xff]  ;;  %v440_v20 = vld [vmem:[%s1014_s3 + $0x38] sm:$0xff] }
  0x12   : > { %456 = vmatpush.msra.mxu1 %v445_v14  ;;  %v439_v21 = vld [vmem:[%s1014_s3 + $0x30] sm:$0xff]  ;;  %v438_v22 = vld [vmem:[%s1014_s3 + $0x28] sm:$0xff]  ;;  %v293_v23 = vld [vmem:[%s828_s9 + $0x58] sm:$0xff] }
  0x13   : > { %721 = vmatpush.msra.mxu3 %v445_v14  ;;  %v437_v24 = vld [vmem:[%s1014_s3 + $0x20] sm:$0xff]  ;;  %v436_v25 = vld [vmem:[%s1014_s3 + $0x18] sm:$0xff]  ;;  %v435_v26 = vld [vmem:[%s1014_s3 + $0x10] sm:$0xff] }
  0x14   : > { %457 = vmatpush.msra.mxu1 %v444_v15  ;;  %v294_v27 = vld [vmem:[%s828_s9 + $0x60] sm:$0xff]  ;;  %v434_v28 = vld [vmem:[%s1014_s3 + $0x8] sm:$0xff]  ;;  %v296_v31 = vld [vmem:[%s828_s9 + $0x70] sm:$0xff] }
  0x15   : > { %722 = vmatpush.msra.mxu3 %v444_v15  ;;  %v433_v29 = vld [vmem:[%s1014_s3] sm:$0xff]  ;;  %v295_v30 = vld [vmem:[%s828_s9 + $0x68] sm:$0xff]  ;;  %v297_v32 = vld [vmem:[%s828_s9 + $0x78] sm:$0xff] }
  0x16   : > { %458 = vmatpush.msra.mxu1 %v443_v16  ;;  %v913_v33 = vld [vmem:[%s1013_s2] ss:$0 sm:$0xff]  ;;  %v549_v61 = vld [vmem:[%s1016_s5 + $0x78] sm:$0xff]  ;;  %v548_v0 = vld [vmem:[%s1016_s5 + $0x70] sm:$0xff] }
  0x17   : > { %701 = vmatmul.msk.f32.gmra.mxu0 %vm303_vm0, %v283_v2  ;;  %723 = vmatpush.msra.mxu3 %v443_v16  ;;  %v547_v2 = vld [vmem:[%s1016_s5 + $0x68] sm:$0xff]  ;;  %v542_v10 = vld [vmem:[%s1016_s5 + $0x40] sm:$0xff]  ;;  %v541_v11 = vld [vmem:[%s1016_s5 + $0x38] sm:$0xff] }
  0x18   : > { %459 = vmatpush.msra.mxu1 %v442_v17  ;;  %554 = vmatpush.msra.mxu2 %v549_v61  ;;  %v540_v14 = vld [vmem:[%s1016_s5 + $0x30] sm:$0xff]  ;;  %v539_v16 = vld [vmem:[%s1016_s5 + $0x28] sm:$0xff] }
  0x19   : > { %724 = vmatpush.msra.mxu3 %v442_v17  ;;  %v538_v17 = vld [vmem:[%s1016_s5 + $0x20] sm:$0xff] }
  0x1a   : > { %460 = vmatpush.msra.mxu1 %v441_v19  ;;  %555 = vmatpush.msra.mxu2 %v548_v0 }
  0x1b   : > { %725 = vmatpush.msra.mxu3 %v441_v19 }
  0x1c   : > { %461 = vmatpush.msra.mxu1 %v440_v20  ;;  %556 = vmatpush.msra.mxu2 %v547_v2 }
  0x1d   : > { %726 = vmatpush.msra.mxu3 %v440_v20 }
  0x1e   : > { %462 = vmatpush.msra.mxu1 %v439_v21 }
  0x1f   : > { %702 = vmatmul.msk.f32.gmra.mxu0 %vm303_vm0, %v284_v3  ;;  %727 = vmatpush.msra.mxu3 %v439_v21  ;;  %v546_v3 = vld [vmem:[%s1016_s5 + $0x60] sm:$0xff]  ;;  %v536_v21 = vld [vmem:[%s1016_s5 + $0x10] sm:$0xff] }
  0x20   : > { %463 = vmatpush.msra.mxu1 %v438_v22  ;;  %557 = vmatpush.msra.mxu2 %v546_v3 }
  0x21   : > { %728 = vmatpush.msra.mxu3 %v438_v22 }
  0x22   : > { %464 = vmatpush.msra.mxu1 %v437_v24 }
  0x23   : > { %729 = vmatpush.msra.mxu3 %v437_v24  ;;  %v534_v24 = vld [vmem:[%s1016_s5] sm:$0xff] }
  0x24   : > { %465 = vmatpush.msra.mxu1 %v436_v25 }
  0x25   : > { %730 = vmatpush.msra.mxu3 %v436_v25 }
  0x26   : > { %466 = vmatpush.msra.mxu1 %v435_v26 }
  0x27   : > { %703 = vmatmul.msk.f32.gmra.mxu0 %vm303_vm0, %v285_v4  ;;  %731 = vmatpush.msra.mxu3 %v435_v26  ;;  %v545_v4 = vld [vmem:[%s1016_s5 + $0x58] sm:$0xff] }
  0x28   : > { %467 = vmatpush.msra.mxu1 %v434_v28  ;;  %558 = vmatpush.msra.mxu2 %v545_v4 }
  0x29   : > { %732 = vmatpush.msra.mxu3 %v434_v28 }
  0x2a   : > { %468 = vmatpush.msra.mxu1 %v433_v29 }
  0x2b   : > { %733 = vmatpush.msra.mxu3 %v433_v29 }
  0x2d   : > { %734 = vmatpush.msrb.mxu3 %v549_v61 }
  0x2f   : > { %704 = vmatmul.msk.f32.gmra.mxu0 %vm303_vm0, %v286_v5  ;;  %735 = vmatpush.msrb.mxu3 %v548_v0 }
  0x31   : > { %736 = vmatpush.msrb.mxu3 %v547_v2 }
  0x33   : > { %737 = vmatpush.msrb.mxu3 %v546_v3 }
  0x35   : > { %738 = vmatpush.msrb.mxu3 %v545_v4 }
  0x37   : > { %705 = vmatmul.msk.f32.gmra.mxu0 %vm303_vm0, %v287_v6 }
  0x3f   : > { %706 = vmatmul.msk.f32.gmra.mxu0 %vm303_vm0, %v288_v7  ;;  %v544_v7 = vld [vmem:[%s1016_s5 + $0x50] sm:$0xff] }
  0x40   : > { %559 = vmatpush.msra.mxu2 %v544_v7  ;;  %739 = vmatpush.msrb.mxu3 %v544_v7 }
  0x47   : > { %707 = vmatmul.msk.f32.gmra.mxu0 %vm303_vm0, %v289_v8 }
  0x4f   : > { %708 = vmatmul.msk.f32.gmra.mxu0 %vm303_vm0, %v290_v9  ;;  %v543_v9 = vld [vmem:[%s1016_s5 + $0x48] sm:$0xff] }
  0x50   : > { %560 = vmatpush.msra.mxu2 %v543_v9  ;;  %740 = vmatpush.msrb.mxu3 %v543_v9 }
  0x52   : > { %561 = vmatpush.msra.mxu2 %v542_v10  ;;  %741 = vmatpush.msrb.mxu3 %v542_v10 }
  0x54   : > { %562 = vmatpush.msra.mxu2 %v541_v11  ;;  %742 = vmatpush.msrb.mxu3 %v541_v11 }
  0x56   : > { %563 = vmatpush.msra.mxu2 %v540_v14  ;;  %743 = vmatpush.msrb.mxu3 %v540_v14 }
  0x57   : > { %709 = vmatmul.msk.f32.gmra.mxu0 %vm303_vm0, %v291_v13 }
  0x58   : > { %564 = vmatpush.msra.mxu2 %v539_v16  ;;  %744 = vmatpush.msrb.mxu3 %v539_v16 }
  0x5a   : > { %565 = vmatpush.msra.mxu2 %v538_v17  ;;  %745 = vmatpush.msrb.mxu3 %v538_v17 }
  0x5f   : > { %710 = vmatmul.msk.f32.gmra.mxu0 %vm303_vm0, %v292_v18  ;;  %v537_v18 = vld [vmem:[%s1016_s5 + $0x18] sm:$0xff] }
  0x60   : > { %566 = vmatpush.msra.mxu2 %v537_v18  ;;  %746 = vmatpush.msrb.mxu3 %v537_v18 }
  0x62   : > { %567 = vmatpush.msra.mxu2 %v536_v21  ;;  %747 = vmatpush.msrb.mxu3 %v536_v21 }
  0x67   : > { %711 = vmatmul.msk.f32.gmra.mxu0 %vm303_vm0, %v293_v23  ;;  %v535_v23 = vld [vmem:[%s1016_s5 + $0x8] sm:$0xff] }
  0x68   : > { %568 = vmatpush.msra.mxu2 %v535_v23  ;;  %748 = vmatpush.msrb.mxu3 %v535_v23 }
  0x6a   : > { %569 = vmatpush.msra.mxu2 %v534_v24  ;;  %749 = vmatpush.msrb.mxu3 %v534_v24 }
  0x6f   : > { %712 = vmatmul.msk.f32.gmra.mxu0 %vm303_vm0, %v294_v27 }
  0x77   : > { %713 = vmatmul.msk.f32.gmra.mxu0 %vm303_vm0, %v295_v30 }
  0x7f   : > { %714 = vmatmul.msk.f32.gmra.mxu0 %vm303_vm0, %v296_v31 }
  0x87   : > { %715 = vmatmul.msk.f32.gmra.mxu0 %vm303_vm0, %v297_v32 }
  0x8c   : > { %v369_v34 = vpop.f32.mrf.mxu0 }
  0x8d   : > { %v370_v35 = vadd.f32 %v913_v33, %v369_v34 }
  0x8f   : > { %v417_v36 = vmax.f32 %v370_v35, 0.0  ;;  %v759_v35 = vld [vmem:[%s1015_s4] ss:$0 sm:$0xff] }
  0x91   : > { %469 = vmatmul.f32.vlgmr.msra.gmra.mxu1 %v417_v36 }
  0x94   : > { %v372_v37 = vpop.f32.mrf.mxu0 }
  0x95   : > { %v373_v38 = vadd.f32 %v913_v33, %v372_v37 }
  0x97   : > { %v418_v39 = vmax.f32 %v373_v38, 0.0 }
  0x99   : > { %472 = vmatmul.f32.gmra.mxu1 %v418_v39 }
  0x9c   : > { %v375_v40 = vpop.f32.mrf.mxu0 }
  0x9d   : > { %v376_v41 = vadd.f32 %v913_v33, %v375_v40 }
  0x9f   : > { %v419_v42 = vmax.f32 %v376_v41, 0.0 }
  0xa1   : > { %475 = vmatmul.f32.gmra.mxu1 %v419_v42 }
  0xa4   : > { %v378_v43 = vpop.f32.mrf.mxu0 }
  0xa5   : > { %v379_v44 = vadd.f32 %v913_v33, %v378_v43 }
  0xa7   : > { %v420_v45 = vmax.f32 %v379_v44, 0.0 }
  0xa9   : > { %478 = vmatmul.f32.gmra.mxu1 %v420_v45 }
  0xac   : > { %v381_v46 = vpop.f32.mrf.mxu0 }
  0xad   : > { %v382_v47 = vadd.f32 %v913_v33, %v381_v46 }
  0xaf   : > { %v421_v48 = vmax.f32 %v382_v47, 0.0 }
  0xb1   : > { %481 = vmatmul.f32.gmra.mxu1 %v421_v48 }
  0xb4   : > { %v384_v49 = vpop.f32.mrf.mxu0 }
  0xb5   : > { %v385_v50 = vadd.f32 %v913_v33, %v384_v49 }
  0xb7   : > { %v422_v51 = vmax.f32 %v385_v50, 0.0 }
  0xb9   : > { %484 = vmatmul.f32.gmra.mxu1 %v422_v51 }
  0xbc   : > { %v387_v52 = vpop.f32.mrf.mxu0 }
  0xbd   : > { %v388_v53 = vadd.f32 %v913_v33, %v387_v52 }
  0xbf   : > { %v423_v54 = vmax.f32 %v388_v53, 0.0 }
  0xc1   : > { %487 = vmatmul.f32.gmra.mxu1 %v423_v54 }
  0xc4   : > { %v390_v55 = vpop.f32.mrf.mxu0 }
  0xc5   : > { %v391_v56 = vadd.f32 %v913_v33, %v390_v55 }
  0xc7   : > { %v424_v57 = vmax.f32 %v391_v56, 0.0 }
  0xc9   : > { %490 = vmatmul.f32.gmra.mxu1 %v424_v57 }
  0xcc   : > { %v393_v58 = vpop.f32.mrf.mxu0 }
  0xcd   : > { %v394_v59 = vadd.f32 %v913_v33, %v393_v58 }
  0xcf   : > { %v425_v60 = vmax.f32 %v394_v59, 0.0 }
  0xd1   : > { %493 = vmatmul.f32.gmra.mxu1 %v425_v60 }
  0xd4   : > { %v396_v62 = vpop.f32.mrf.mxu0 }
  0xd5   : > { %v397_v63 = vadd.f32 %v913_v33, %v396_v62 }
  0xd7   : > { %v426_v1 = vmax.f32 %v397_v63, 0.0 }
  0xd9   : > { %496 = vmatmul.f32.gmra.mxu1 %v426_v1 }
  0xdc   : > { %v399_v5 = vpop.f32.mrf.mxu0 }
  0xdd   : > { %v400_v6 = vadd.f32 %v913_v33, %v399_v5 }
  0xdf   : > { %v427_v8 = vmax.f32 %v400_v6, 0.0 }
  0xe1   : > { %499 = vmatmul.f32.gmra.mxu1 %v427_v8 }
  0xe4   : > { %v402_v12 = vpop.f32.mrf.mxu0 }
  0xe5   : > { %v403_v13 = vadd.f32 %v913_v33, %v402_v12 }
  0xe7   : > { %v428_v15 = vmax.f32 %v403_v13, 0.0 }
  0xe9   : > { %502 = vmatmul.f32.vlgmr.msra.gmra.mxu3 %v428_v15 }
  0xec   : > { %v405_v19 = vpop.f32.mrf.mxu0 }
  0xed   : > { %v406_v20 = vadd.f32 %v913_v33, %v405_v19  ;;  %v760_v19 = vld [vmem:[%s1017_s6] ss:$0 sm:$0xff] }
  0xef   : > { %v429_v22 = vmax.f32 %v406_v20, 0.0 }
  0xf1   : > { %505 = vmatmul.f32.gmra.mxu3 %v429_v22 }
  0xf4   : > { %v408_v25 = vpop.f32.mrf.mxu0 }
  0xf5   : > { %v409_v26 = vadd.f32 %v913_v33, %v408_v25 }
  0xf7   : > { %v430_v27 = vmax.f32 %v409_v26, 0.0 }
  0xf9   : > { %508 = vmatmul.f32.gmra.mxu3 %v430_v27 }
  0xfc   : > { %v411_v28 = vpop.f32.mrf.mxu0 }
  0xfd   : > { %v412_v29 = vadd.f32 %v913_v33, %v411_v28 }
  0xff   : > { %v431_v30 = vmax.f32 %v412_v29, 0.0 }
 0x101   : > { %511 = vmatmul.f32.gmra.mxu3 %v431_v30 }
 0x104   : > { %v414_v31 = vpop.f32.mrf.mxu0 }
 0x105   : > { %v415_v32 = vadd.f32 %v913_v33, %v414_v31 }
 0x107   : > { %v432_v34 = vmax.f32 %v415_v32, 0.0 }
 0x109   : > { %514 = vmatmul.f32.gmra.mxu3 %v432_v34 }
 0x10e   : > { %v470_v36 = vpop.f32.mrf.mxu1 }
 0x10f   : > { %v471_v37 = vadd.f32 %v759_v35, %v470_v36 }
 0x111   : > { %v518_v38 = vmax.f32 %v471_v37, 0.0 }
 0x113   : > { %570 = vmatmul.f32.vlgmr.msra.gmra.mxu2 %v518_v38 }
 0x116   : > { %v473_v39 = vpop.f32.mrf.mxu1 }
 0x117   : > { %v474_v40 = vadd.f32 %v759_v35, %v473_v39 }
 0x119   : > { %v519_v41 = vmax.f32 %v474_v40, 0.0 }
 0x11b   : > { %573 = vmatmul.f32.gmra.mxu2 %v519_v41 }
 0x11e   : > { %v476_v42 = vpop.f32.mrf.mxu1 }
 0x11f   : > { %v477_v43 = vadd.f32 %v759_v35, %v476_v42 }
 0x121   : > { %v520_v44 = vmax.f32 %v477_v43, 0.0 }
 0x123   : > { %576 = vmatmul.f32.gmra.mxu2 %v520_v44 }
 0x126   : > { %v479_v45 = vpop.f32.mrf.mxu1 }
 0x127   : > { %v480_v33 = vadd.f32 %v759_v35, %v479_v45 }
 0x129   : > { %v521_v46 = vmax.f32 %v480_v33, 0.0 }
 0x12b   : > { %579 = vmatmul.f32.gmra.mxu2 %v521_v46 }
 0x12e   : > { %v482_v47 = vpop.f32.mrf.mxu1 }
 0x12f   : > { %v483_v48 = vadd.f32 %v759_v35, %v482_v47 }
 0x131   : > { %v522_v49 = vmax.f32 %v483_v48, 0.0 }
 0x133   : > { %582 = vmatmul.f32.gmra.mxu2 %v522_v49 }
 0x136   : > { %v485_v50 = vpop.f32.mrf.mxu1 }
 0x137   : > { %v486_v51 = vadd.f32 %v759_v35, %v485_v50 }
 0x139   : > { %v523_v52 = vmax.f32 %v486_v51, 0.0 }
 0x13b   : > { %585 = vmatmul.f32.gmra.mxu2 %v523_v52 }
 0x13e   : > { %v488_v53 = vpop.f32.mrf.mxu1 }
 0x13f   : > { %v489_v54 = vadd.f32 %v759_v35, %v488_v53 }
 0x141   : > { %v524_v55 = vmax.f32 %v489_v54, 0.0 }
 0x143   : > { %588 = vmatmul.f32.gmra.mxu2 %v524_v55 }
 0x146   : > { %v491_v56 = vpop.f32.mrf.mxu1 }
 0x147   : > { %v492_v57 = vadd.f32 %v759_v35, %v491_v56 }
 0x149   : > { %v525_v58 = vmax.f32 %v492_v57, 0.0 }
 0x14b   : > { %591 = vmatmul.f32.gmra.mxu2 %v525_v58 }
 0x14e   : > { %v494_v59 = vpop.f32.mrf.mxu1 }
 0x14f   : > { %v495_v60 = vadd.f32 %v759_v35, %v494_v59 }
 0x151   : > { %v526_v61 = vmax.f32 %v495_v60, 0.0 }
 0x153   : > { %594 = vmatmul.f32.gmra.mxu2 %v526_v61 }
 0x156   : > { %v497_v62 = vpop.f32.mrf.mxu1 }
 0x157   : > { %v498_v63 = vadd.f32 %v759_v35, %v497_v62 }
 0x159   : > { %v527_v0 = vmax.f32 %v498_v63, 0.0 }
 0x15b   : > { %597 = vmatmul.f32.gmra.mxu2 %v527_v0 }
 0x15e   : > { %v500_v1 = vpop.f32.mrf.mxu1 }
 0x15f   : > { %v501_v2 = vadd.f32 %v759_v35, %v500_v1 }
 0x161   : > { %v528_v3 = vmax.f32 %v501_v2, 0.0 }
 0x163   : > { %600 = vmatmul.f32.gmra.mxu2 %v528_v3 }
 0x16c   : > { %v503_v4 = vpop.f32.mrf.mxu3 }
 0x16d   : > { %v504_v5 = vadd.f32 %v759_v35, %v503_v4 }
 0x16f   : > { %v529_v6 = vmax.f32 %v504_v5, 0.0 }
 0x171   : > { %603 = vmatmul.f32.vlgmr.msrb.gmra.mxu3 %v529_v6 }
 0x174   : > { %v506_v7 = vpop.f32.mrf.mxu3 }
 0x175   : > { %v507_v8 = vadd.f32 %v759_v35, %v506_v7 }
 0x177   : > { %v530_v9 = vmax.f32 %v507_v8, 0.0 }
 0x179   : > { %606 = vmatmul.f32.gmra.mxu3 %v530_v9 }
 0x17c   : > { %v509_v10 = vpop.f32.mrf.mxu3 }
 0x17d   : > { %v510_v11 = vadd.f32 %v759_v35, %v509_v10 }
 0x17f   : > { %v531_v12 = vmax.f32 %v510_v11, 0.0 }
 0x181   : > { %609 = vmatmul.f32.gmra.mxu3 %v531_v12 }
 0x184   : > { %v512_v13 = vpop.f32.mrf.mxu3 }
 0x185   : > { %v513_v14 = vadd.f32 %v759_v35, %v512_v13 }
 0x187   : > { %v532_v15 = vmax.f32 %v513_v14, 0.0 }
 0x189   : > { %612 = vmatmul.f32.gmra.mxu3 %v532_v15 }
 0x18c   : > { %v515_v16 = vpop.f32.mrf.mxu3 }
 0x18d   : > { %v516_v17 = vadd.f32 %v759_v35, %v515_v16 }
 0x18f   : > { %v533_v18 = vmax.f32 %v516_v17, 0.0 }
 0x191   : > { %615 = vmatmul.f32.gmra.mxu3 %v533_v18 }
 0x196   : > { %v571_v20 = vpop.f32.mrf.mxu2 }
 0x197   : > { %v572_v21 = vadd.f32 %v760_v19, %v571_v20 }
 0x199   : > { %619 = vst [vmem:[%s990_s23] sm:$0xff] %v572_v21 }
 0x19e   : > { %v574_v22 = vpop.f32.mrf.mxu2 }
 0x19f   : > { %v575_v23 = vadd.f32 %v760_v19, %v574_v22 }
 0x1a1   : > { %620 = vst [vmem:[%s990_s23 + $0x8] sm:$0xff] %v575_v23 }
 0x1a6   : > { %v577_v24 = vpop.f32.mrf.mxu2 }
 0x1a7   : > { %v578_v25 = vadd.f32 %v760_v19, %v577_v24 }
 0x1a9   : > { %621 = vst [vmem:[%s990_s23 + $0x10] sm:$0xff] %v578_v25 }
 0x1ae   : > { %v580_v26 = vpop.f32.mrf.mxu2 }
 0x1af   : > { %v581_v27 = vadd.f32 %v760_v19, %v580_v26 }
 0x1b1   : > { %622 = vst [vmem:[%s990_s23 + $0x18] sm:$0xff] %v581_v27 }
 0x1b6   : > { %v583_v28 = vpop.f32.mrf.mxu2 }
 0x1b7   : > { %v584_v29 = vadd.f32 %v760_v19, %v583_v28 }
 0x1b9   : > { %623 = vst [vmem:[%s990_s23 + $0x20] sm:$0xff] %v584_v29 }
 0x1be   : > { %v586_v30 = vpop.f32.mrf.mxu2 }
 0x1bf   : > { %v587_v31 = vadd.f32 %v760_v19, %v586_v30 }
 0x1c1   : > { %624 = vst [vmem:[%s990_s23 + $0x28] sm:$0xff] %v587_v31 }
 0x1c6   : > { %v589_v32 = vpop.f32.mrf.mxu2 }
 0x1c7   : > { %v590_v34 = vadd.f32 %v760_v19, %v589_v32 }
 0x1c9   : > { %625 = vst [vmem:[%s990_s23 + $0x30] sm:$0xff] %v590_v34 }
 0x1ce   : > { %v592_v35 = vpop.f32.mrf.mxu2 }
 0x1cf   : > { %v593_v36 = vadd.f32 %v760_v19, %v592_v35 }
 0x1d1   : > { %626 = vst [vmem:[%s990_s23 + $0x38] sm:$0xff] %v593_v36 }
 0x1d6   : > { %v595_v37 = vpop.f32.mrf.mxu2 }
 0x1d7   : > { %v596_v38 = vadd.f32 %v760_v19, %v595_v37 }
 0x1d9   : > { %627 = vst [vmem:[%s990_s23 + $0x40] sm:$0xff] %v596_v38 }
 0x1de   : > { %v598_v39 = vpop.f32.mrf.mxu2 }
 0x1df   : > { %v599_v40 = vadd.f32 %v760_v19, %v598_v39 }
 0x1e1   : > { %628 = vst [vmem:[%s990_s23 + $0x48] sm:$0xff] %v599_v40 }
 0x1e6   : > { %v601_v41 = vpop.f32.mrf.mxu2 }
 0x1e7   : > { %v602_v42 = vadd.f32 %v760_v19, %v601_v41 }
 0x1e9   : > { %629 = vst [vmem:[%s990_s23 + $0x50] sm:$0xff] %v602_v42 }
 0x1f4   : > { %v604_v43 = vpop.f32.mrf.mxu3 }
 0x1f5   : > { %v605_v44 = vadd.f32 %v760_v19, %v604_v43 }
 0x1f7   : > { %630 = vst [vmem:[%s990_s23 + $0x58] sm:$0xff] %v605_v44 }
 0x1fc   : > { %v607_v45 = vpop.f32.mrf.mxu3 }
 0x1fd   : > { %v608_v33 = vadd.f32 %v760_v19, %v607_v45 }
 0x1ff   : > { %631 = vst [vmem:[%s990_s23 + $0x60] sm:$0xff] %v608_v33 }
 0x204   : > { %v610_v46 = vpop.f32.mrf.mxu3 }
 0x205   : > { %v611_v47 = vadd.f32 %v760_v19, %v610_v46 }
 0x207   : > { %632 = vst [vmem:[%s990_s23 + $0x68] sm:$0xff] %v611_v47 }
 0x20c   : > { %v613_v48 = vpop.f32.mrf.mxu3 }
 0x20d   : > { %v614_v49 = vadd.f32 %v760_v19, %v613_v48 }
 0x20f   : > { %633 = vst [vmem:[%s990_s23 + $0x70] sm:$0xff] %v614_v49 }
 0x214   : > { %v616_v50 = vpop.f32.mrf.mxu3 }
 0x215   : > { %v617_v51 = vadd.f32 %v760_v19, %v616_v50 }
 0x217   : > { %634 = vst [vmem:[%s990_s23 + $0x78] sm:$0xff] %v617_v51 }
 0x218 PF: > { %s17_s24 = sadd.s32 1, %s767_s24  }
 0x219   : > { %p14_p4 = scmp.ge.s32.totalorder %s17_s24, 4  }
 0x21b   :  { %16 = sbr.rel (!%p14_p4) target bundleno = 1 (0x1), region = 78 }

</bundles_post_ra>
